<compile_context>
chip_gen: v7x
topology: tpu7x:2x2x1
jax: 0.10.0
libtpu: 0.0.40
codegen_flags: <defaults>
</compile_context>

<pallas_src>
import math

import jax
import jax.numpy as jnp
from jax.experimental import pallas as pl
from jax.experimental.pallas import tpu as pltpu

_TWO_PI = 2.0 * math.pi

_LANE_CANDIDATES = (2048, 1024, 512, 256, 128)
_TARGET_BLOCK_BYTES = 4 << 20      # per-array block target (v6e/v7x roofline)
_RAGGED_LANE_BLOCK = 128 * 1024    # elements per lane-block on the ragged path
_MIN_SPLIT_BYTES = 256 << 10       # split single-block slabs above this (v7x 2 TCs)
_MIN_VMEM_LIMIT = 32 << 20
_MAX_VMEM_LIMIT = 48 << 20         # v7x has only 64 MiB physical VMEM; stay under


def _make_kernel(loc_scalar: bool, scale_scalar: bool, z_scalar: bool):
    """Kernel specialized on which operands arrive as SMEM scalars."""

    def kernel(loc_ref, scale_ref, z_ref, o_ref):
        loc = loc_ref[0] if loc_scalar else loc_ref[...].astype(jnp.float32)
        z = z_ref[0] if z_scalar else z_ref[...].astype(jnp.float32)
        diff = loc - z
        sq = diff * diff
        if scale_scalar:
            # scale_ref holds [-0.5*log(2*pi*var), 1/(2*var)] precomputed once;
            # the per-element body is pure FMA (keeps the kernel DMA-bound).
            out = scale_ref[0] - sq * scale_ref[1]
        else:
            scale = scale_ref[...].astype(jnp.float32)
            var = scale * scale
            out = -0.5 * jnp.log(_TWO_PI * var) - sq / (2.0 * var)
        o_ref[...] = out.astype(o_ref.dtype)

    return kernel


def _round_up(x, m):
    return ((x + m - 1) // m) * m


def normal_log_prob(loc, scale, z):
    """Elementwise Normal log-prob via a Pallas TPU kernel."""
    loc, scale, z = jnp.asarray(loc), jnp.asarray(scale), jnp.asarray(z)
    out_shape = jnp.broadcast_shapes(loc.shape, scale.shape, z.shape)
    rt = jnp.result_type(loc.dtype, scale.dtype, z.dtype)
    out_dtype = rt if jnp.issubdtype(rt, jnp.floating) else jnp.float32
    n = math.prod(out_shape)
    if n == 0:
        return jnp.zeros(out_shape, out_dtype)

    # Classify operands: size-1 -> SMEM scalar path; full-size -> VMEM tile.
    operands, is_scalar = [], []
    for x, is_scale in ((loc, False), (scale, True), (z, False)):
        if x.size == 1 and n > 1:
            is_scalar.append(True)
            xs = x.reshape(()).astype(jnp.float32)
            if is_scale:
                var = xs * xs
                # Hoist the transcendentals out of the kernel entirely.
                operands.append(
                    jnp.stack([-0.5 * jnp.log(_TWO_PI * var), 0.5 / var]))
            else:
                operands.append(xs.reshape(1))
        else:
            is_scalar.append(False)
            if x.shape != out_shape:
                # Rare partial-broadcast case: materialize (full-size already).
                x = jnp.broadcast_to(x, out_shape)
            operands.append(x)
    loc_scalar, scale_scalar, z_scalar = is_scalar

    tile_items = [jnp.dtype(op.dtype).itemsize
                  for op, s in zip(operands, is_scalar) if not s]
    tile_items.append(jnp.dtype(out_dtype).itemsize)
    max_item, min_item = max(tile_items), min(tile_items)
    sub = 8 * max(1, 4 // min_item)   # sublane multiple: 8 f32, 16 bf16, 32 int8

    lanes = next((c for c in _LANE_CANDIDATES if n % c == 0), None)
    if lanes is not None:
        rows = n // lanes
        tr = max(sub, (_TARGET_BLOCK_BYTES // (lanes * max_item)) // sub * sub)
        if rows <= tr:
            if rows >= 2 * sub and rows * lanes * max_item >= _MIN_SPLIT_BYTES:
                # Guarantee >=2 grid steps so v7x's two TensorCores both run.
                tr = _round_up(-(-rows // 2), sub)
            else:
                tr = rows
        blk, arr_shape = (tr, lanes), (rows, lanes)
        grid = (pl.cdiv(rows, tr),)
        index_map = lambda i: (i, 0)
        per_stream_bytes = [tr * lanes * it for it in tile_items]
    else:
        # Ragged n: (1, n) slab, lane-blocked grid; Pallas masks the partial
        # tail block so no jnp.pad copies are needed. Garbage in the masked
        # tail may produce NaN/Inf but its writeback is suppressed.
        lane_blk = n if n <= _RAGGED_LANE_BLOCK else (_RAGGED_LANE_BLOCK // 128) * 128
        blk, arr_shape = (1, lane_blk), (1, n)
        grid = (pl.cdiv(n, lane_blk),)
        index_map = lambda i: (0, i)
        # (1, L) blocks pad to a full sublane tile in VMEM (~8x data bytes).
        per_stream_bytes = [8 * lane_blk * 4 for _ in tile_items]

    vmem_need = 2 * sum(per_stream_bytes)          # double-buffered streams
    vmem_limit = int(min(_MAX_VMEM_LIMIT,
                         max(_MIN_VMEM_LIMIT, vmem_need * 5 // 4)))

    tile_spec = pl.BlockSpec(blk, index_map)
    smem_spec = pl.BlockSpec(memory_space=pltpu.MemorySpace.SMEM)
    in_specs = [smem_spec if s else tile_spec for s in is_scalar]
    call_args = [op if s else op.reshape(arr_shape)
                 for op, s in zip(operands, is_scalar)]

    bytes_accessed = n * jnp.dtype(out_dtype).itemsize + sum(
        n * jnp.dtype(op.dtype).itemsize
        for op, s in zip(operands, is_scalar) if not s)

    out2d = pl.pallas_call(
        _make_kernel(loc_scalar, scale_scalar, z_scalar),
        out_shape=jax.ShapeDtypeStruct(arr_shape, out_dtype),
        grid_spec=pltpu.PrefetchScalarGridSpec(
            num_scalar_prefetch=0,
            grid=grid,
            in_specs=in_specs,
            out_specs=tile_spec,
        ),
        compiler_params=pltpu.CompilerParams(
            dimension_semantics=("parallel",),
            vmem_limit_bytes=vmem_limit,
        ),
        cost_estimate=pl.CostEstimate(
            flops=6 * n,
            transcendentals=0 if scale_scalar else 2 * n,
            bytes_accessed=bytes_accessed,
        ),
    )(*call_args)

    return out2d.reshape(out_shape)


if __name__ == "__main__":
    key = jax.random.PRNGKey(0)
    k1, k2, k3 = jax.random.split(key, 3)
    shape = (2, 4, 16, 16)  # small NCHW-like inputs
    loc = jax.random.normal(k1, shape, dtype=jnp.float32)
    scale = jax.random.uniform(k2, shape, dtype=jnp.float32, minval=0.5, maxval=2.0)
    z = jax.random.normal(k3, shape, dtype=jnp.float32)

    def ref_fn(l, s, zz):
        var = jnp.square(s)
        return -0.5 * jnp.log(_TWO_PI * var) - jnp.square(l - zz) / (2.0 * var)

    # 1) all-tensor path (lane-dense 2-D slab).
    out = jax.block_until_ready(normal_log_prob(loc, scale, z))
    assert out.shape == shape and out.dtype == jnp.float32
    assert jnp.allclose(out, ref_fn(loc, scale, z), atol=1e-5, rtol=1e-5), "mismatch (tensor path)"

    # 2) scalar loc / scalar scale fast path (SMEM operands, hoisted log/recip).
    loc_s = jnp.float32(-0.25)
    scale_s = jnp.float32(1.3)
    out_s = jax.block_until_ready(normal_log_prob(loc_s, scale_s, z))
    ref_s = ref_fn(jnp.broadcast_to(loc_s, shape), jnp.broadcast_to(scale_s, shape), z)
    assert out_s.shape == shape
    assert jnp.allclose(out_s, ref_s, atol=1e-5, rtol=1e-5), "mismatch (scalar path)"

    # 3) ragged (non-multiple-of-128) path: (1, n) slab, no pad copies.
    rshape = (3, 5, 7)
    loc_r = jax.random.normal(k1, rshape, dtype=jnp.float32)
    scale_r = jax.random.uniform(k2, rshape, dtype=jnp.float32, minval=0.5, maxval=2.0)
    z_r = jax.random.normal(k3, rshape, dtype=jnp.float32)
    out_r = jax.block_until_ready(normal_log_prob(loc_r, scale_r, z_r))
    assert out_r.shape == rshape
    assert jnp.allclose(out_r, ref_fn(loc_r, scale_r, z_r), atol=1e-5, rtol=1e-5), "mismatch (ragged path)"

    print("KERNEL_OK")
</pallas_src>

<mosaic_0001>
module attributes {stable_mosaic.version = 11 : i64} {
  func.func @kernel(%arg0: i32, %arg1: memref<1x2048xf32, #tpu.memory_space<vmem>>, %arg2: memref<1x2048xf32, #tpu.memory_space<vmem>>, %arg3: memref<1x2048xf32, #tpu.memory_space<vmem>>, %arg4: memref<1x2048xf32, #tpu.memory_space<vmem>>) attributes {dimension_semantics = [#tpu.dimension_semantics<parallel>], iteration_bounds = array<i64: 1>, scalar_prefetch = 0 : i64, scratch_operands = 0 : i64, tpu.core_type = #tpu.core_type<tc>, window_params = [{transform_indices = @transform_0, window_bounds = array<i64: 1, 2048>}, {transform_indices = @transform_1, window_bounds = array<i64: 1, 2048>}, {transform_indices = @transform_2, window_bounds = array<i64: 1, 2048>}, {transform_indices = @transform_3, window_bounds = array<i64: 1, 2048>}]} {
    %c0 = arith.constant 0 : index
    %c0_0 = arith.constant 0 : index
    %0 = vector.load %arg1[%c0, %c0_0] : memref<1x2048xf32, #tpu.memory_space<vmem>>, vector<1x2048xf32>
    %c0_1 = arith.constant 0 : index
    %c0_2 = arith.constant 0 : index
    %1 = vector.load %arg3[%c0_1, %c0_2] : memref<1x2048xf32, #tpu.memory_space<vmem>>, vector<1x2048xf32>
    %2 = arith.subf %0, %1 : vector<1x2048xf32>
    %3 = arith.mulf %2, %2 : vector<1x2048xf32>
    %c0_3 = arith.constant 0 : index
    %c0_4 = arith.constant 0 : index
    %4 = vector.load %arg2[%c0_3, %c0_4] : memref<1x2048xf32, #tpu.memory_space<vmem>>, vector<1x2048xf32>
    %5 = arith.mulf %4, %4 : vector<1x2048xf32>
    %cst = arith.constant 6.28318548 : f32
    %6 = vector.broadcast %cst : f32 to vector<1x2048xf32>
    %7 = arith.mulf %6, %5 : vector<1x2048xf32>
    %8 = math.log %7 : vector<1x2048xf32>
    %cst_5 = arith.constant -5.000000e-01 : f32
    %9 = vector.broadcast %cst_5 : f32 to vector<1x2048xf32>
    %10 = arith.mulf %9, %8 : vector<1x2048xf32>
    %cst_6 = arith.constant 2.000000e+00 : f32
    %11 = vector.broadcast %cst_6 : f32 to vector<1x2048xf32>
    %12 = arith.mulf %11, %5 : vector<1x2048xf32>
    %13 = arith.divf %3, %12 : vector<1x2048xf32>
    %14 = arith.subf %10, %13 : vector<1x2048xf32>
    %c0_7 = arith.constant 0 : index
    %c0_8 = arith.constant 0 : index
    %15 = vector.load %arg4[%c0_7, %c0_8] : memref<1x2048xf32, #tpu.memory_space<vmem>>, vector<1x2048xf32>
    tpu.vector_store %arg4[%c0_7, %c0_8], %14 {strides = array<i32>} : memref<1x2048xf32, #tpu.memory_space<vmem>>, vector<1x2048xf32>,
    return
  }
  func.func @transform_0(%arg0: i32) -> (i32, i32) {
    %c0_i32 = arith.constant 0 : i32
    %c0_i32_0 = arith.constant 0 : i32
    return %arg0, %c0_i32 : i32, i32
  }
  func.func @transform_1(%arg0: i32) -> (i32, i32) {
    %c0_i32 = arith.constant 0 : i32
    %c0_i32_0 = arith.constant 0 : i32
    return %arg0, %c0_i32 : i32, i32
  }
  func.func @transform_2(%arg0: i32) -> (i32, i32) {
    %c0_i32 = arith.constant 0 : i32
    %c0_i32_0 = arith.constant 0 : i32
    return %arg0, %c0_i32 : i32, i32
  }
  func.func @transform_3(%arg0: i32) -> (i32, i32) {
    %c0_i32 = arith.constant 0 : i32
    %c0_i32_0 = arith.constant 0 : i32
    return %arg0, %c0_i32 : i32, i32
  }
}

</mosaic_0001>

<bundles_post_ra>
// kernel: tpu_custom_call.1
= control target key start
LH: loop header
LB: loop body
LE: loop exit
PB: predicated region body
PF: predicated region fallthrough
CT: control target
= control target key end

     0   :  { %8 = vsyncpa [#allocation3], 0  ;;  %s274_s0 = inlined_call_operand.hbm [shape: f32[1,2048], index: 0, kind: input, shape index: {}]   ;;  %s275_s1 = inlined_call_operand.hbm [shape: f32[1,2048], index: 1, kind: input, shape index: {}]   ;;  %s276_s2 = inlined_call_operand.hbm [shape: f32[1,2048], index: 2, kind: input, shape index: {}]   ;;  %s277_s3 = inlined_call_operand.hbm [shape: f32[1,2048], index: 3, kind: output, shape index: {}]  }
   0x1   :  { %9 = vsyncpa [#allocation6], 0 }
   0x2   :  { %10 = vsyncpa [#allocation4], 0  ;;  %s202_s12 = smov [#allocation5]   ;;  %s203_s14 = smov [#allocation2]  }
   0x3   :  { %s27_s13 = sshll.u32 %s202_s12, 4  ;;  %s17_s15 = sshll.u32 %s203_s14, 4  ;;  %s28_s13 = int_to_ptr.vmem [resolvable:$true] %s27_s13  ;;  %s18_s15 = int_to_ptr.vmem [resolvable:$true] %s17_s15 }
   0x4   :  { %s108_s18 = scalar_lea.hbm %s275_s1, 256 }
   0x5   :  { %p109_p0 = scmp.ne.s32.totalorder %s275_s1, %s108_s18  ;;  %p112_p1 = scmp.lt.u32.totalorder %s108_s18, %s275_s1 }
   0x7   :  { %p114_p2 = pnand %p112_p1, %p109_p0 }
   0x9   :  { %117 = shalt.err (!%p114_p2)
}
   0xa   :  { %s118_s23 = scalar_lea.vmem %s28_s13, 256  ;;  %p123_p4 = scmp.lt.s32.totalorder %s28_s13, %s28_s13 }
   0xb   :  { %p119_p3 = scmp.ne.s32.totalorder %s28_s13, %s118_s23  ;;  %p124_p5 = scmp.lt.s32.totalorder %s118_s23, %s118_s23 }
   0xd   :  { %p125_p6 = por %p124_p5, %p123_p4 }
   0xf   :  { %p126_p7 = pnand %p125_p6, %p119_p3 }
  0x11   :  { %129 = shalt.err (!%p126_p7)
}
  0x12   :  { %30 = dma.hbm_to_vmem [thread:$0]  %s275_s1, 256, %s28_s13, [#allocation6]  }
  0x13   :  { %s130_s28 = scalar_lea.hbm %s274_s0, 256 }
  0x14   :  { %p131_p8 = scmp.ne.s32.totalorder %s274_s0, %s130_s28  ;;  %p134_p9 = scmp.lt.u32.totalorder %s130_s28, %s274_s0 }
  0x16   :  { %p136_p10 = pnand %p134_p9, %p131_p8 }
  0x18   :  { %139 = shalt.err (!%p136_p10)
}
  0x19   :  { %s140_s6 = scalar_lea.vmem %s18_s15, 256  ;;  %p145_p12 = scmp.lt.s32.totalorder %s18_s15, %s18_s15 }
  0x1a   :  { %p141_p11 = scmp.ne.s32.totalorder %s18_s15, %s140_s6  ;;  %p146_p13 = scmp.lt.s32.totalorder %s140_s6, %s140_s6 }
  0x1c   :  { %p147_p0 = por %p146_p13, %p145_p12 }
  0x1e   :  { %p148_p1 = pnand %p147_p0, %p141_p11 }
  0x20   :  { %151 = shalt.err (!%p148_p1)
}
  0x21   :  { %20 = dma.hbm_to_vmem [thread:$0]  %s274_s0, 256, %s18_s15, [#allocation3]  }
  0x22   :  { %s204_s8 = smov [#allocation7]   ;;  %s152_s12 = scalar_lea.hbm %s276_s2, 256 }
  0x23   :  { %s37_s9 = sshll.u32 %s204_s8, 4  ;;  %p153_p2 = scmp.ne.s32.totalorder %s276_s2, %s152_s12  ;;  %s38_s9 = int_to_ptr.vmem [resolvable:$true] %s37_s9 }
  0x24   :  { %p156_p3 = scmp.lt.u32.totalorder %s152_s12, %s276_s2 }
  0x26   :  { %p158_p4 = pnand %p156_p3, %p153_p2 }
  0x28   :  { %161 = shalt.err (!%p158_p4)
}
  0x29   :  { %s162_s18 = scalar_lea.vmem %s38_s9, 256  ;;  %p167_p6 = scmp.lt.s32.totalorder %s38_s9, %s38_s9 }
  0x2a   :  { %p163_p5 = scmp.ne.s32.totalorder %s38_s9, %s162_s18  ;;  %p168_p7 = scmp.lt.s32.totalorder %s162_s18, %s162_s18 }
  0x2c   :  { %p169_p8 = por %p168_p7, %p167_p6 }
  0x2e   :  { %p170_p9 = pnand %p169_p8, %p163_p5 }
  0x30   :  { %173 = shalt.err (!%p170_p9)
}
  0x31   :  { %40 = dma.hbm_to_vmem [thread:$0]  %s276_s2, 256, %s38_s9, [#allocation6]  }
  0x32   :  { %196 = dma.done.wait [#allocation3], 256  }
  0x33   :  { %197 = vsyncadd [#allocation3], 4294967040 }
  0x34   :  { %198 = dma.done.wait [#allocation6], 512  }
  0x35   :  { %199 = vsyncadd [#allocation6], 4294966784  ;;  %v58_v0 = vld [vmem:[#allocation5] sm:$0xff]  ;;  %v59_v2 = vld [vmem:[#allocation5 + $0x8] sm:$0xff]  ;;  %s205_s2 = smov [#allocation8]  }
  0x36   :  { %v60_v1 = vmul.f32 %v58_v0, %v58_v0  ;;  %v61_v3 = vmul.f32 %v59_v2, %v59_v2  ;;  %v50_v8 = vld [vmem:[#allocation2] sm:$0xff]  ;;  %v51_v10 = vld [vmem:[#allocation2 + $0x8] sm:$0xff]  ;;  %s86_s19 = sshll.u32 %s205_s2, 4  ;;  %s87_s19 = int_to_ptr.vmem [resolvable:$true] %s86_s19 }
  0x37   :  { %v52_v9 = vld [vmem:[#allocation7] sm:$0xff]  ;;  %v53_v11 = vld [vmem:[#allocation7 + $0x8] sm:$0xff]  ;;  %s174_s20 = scalar_lea.vmem %s87_s19, 256  ;;  %p179_p11 = scmp.lt.s32.totalorder %s87_s19, %s87_s19 }
  0x38   :  { %v62_v4 = vmul.f32 6.2831855, %v60_v1  ;;  %v70_v5 = vmul.f32 2.0, %v60_v1  ;;  %v63_v6 = vmul.f32 6.2831855, %v61_v3  ;;  %v71_v7 = vmul.f32 2.0, %v61_v3  ;;  %p175_p10 = scmp.ne.s32.totalorder %s87_s19, %s174_s20  ;;  %p180_p12 = scmp.lt.s32.totalorder %s174_s20, %s174_s20 }
  0x39   :  { %v54_v12 = vsub.f32 %v50_v8, %v52_v9  ;;  %v55_v13 = vsub.f32 %v51_v10, %v53_v11 }
  0x3a   :  { %100 = vlog2.f32 %v62_v4  ;;  %p181_p13 = por %p180_p12, %p179_p11 }
  0x3b   :  { %102 = vrcp.f32 %v70_v5  ;;  %v56_v14 = vmul.f32 %v54_v12, %v54_v12  ;;  %v57_v16 = vmul.f32 %v55_v13, %v55_v13 }
  0x3c   :  { %104 = vlog2.f32 %v63_v6  ;;  %p182_p0 = pnand %p181_p13, %p175_p10 }
  0x3d   :  { %106 = vrcp.f32 %v71_v7 }
  0x44   :  { %v101_v15 = vpop.eup %100 }
  0x45   :  { %v103_v17 = vpop.eup %102  ;;  %v65_v18 = vmul.f32 0.6931472, %v101_v15 }
  0x46   :  { %v105_v19 = vpop.eup %104  ;;  %v73_v20 = vmul.f32 %v103_v17, %v56_v14 }
  0x47   :  { %v107_v21 = vpop.eup %106  ;;  %v68_v22 = vmul.f32 -0.5, %v65_v18  ;;  %v67_v23 = vmul.f32 0.6931472, %v105_v19 }
  0x48   :  { %v75_v24 = vmul.f32 %v107_v21, %v57_v16 }
  0x49   :  { %v76_v25 = vsub.f32 %v68_v22, %v73_v20  ;;  %v69_v26 = vmul.f32 -0.5, %v67_v23 }
  0x4b   :  { %78 = vst [vmem:[#allocation8] sm:$0xff] %v76_v25  ;;  %v77_v27 = vsub.f32 %v69_v26, %v75_v24 }
  0x4d   :  { %79 = vst [vmem:[#allocation8 + $0x8] sm:$0xff] %v77_v27 }
  0x4e   :  { %185 = shalt.err (!%p182_p0)
}
  0x4f   :  { %s186_s23 = scalar_lea.hbm %s277_s3, 256 }
  0x50   :  { %p187_p1 = scmp.ne.s32.totalorder %s277_s3, %s186_s23  ;;  %p190_p2 = scmp.lt.u32.totalorder %s186_s23, %s277_s3 }
  0x52   :  { %p192_p3 = pnand %p190_p2, %p187_p1 }
  0x54   :  { %195 = shalt.err (!%p192_p3)
}
  0x55   :  { %89 = dma.vmem_to_hbm [thread:$0]  %s87_s19, 256, %s277_s3, [#allocation4]  }
  0x56   :  { %200 = dma.done.wait [#allocation4], 256  }
  0x57   :  { %201 = vsyncadd [#allocation4], 4294967040 }
  0x58   :  { %93 = vsyncpa [#allocation3], 1 }
  0x59   :  { %94 = vsyncpa [#allocation6], 1 }
  0x5a   :  { %95 = vsyncpa [#allocation4], 1 }

</bundles_post_ra>
